<compile_context>
chip_gen: v7x
topology: tpu7x:2x2x1
jax: 0.10.0
libtpu: 0.0.40
codegen_flags: <defaults>
</compile_context>

<pallas_src>
import math
from functools import partial

import jax
import jax.numpy as jnp
from jax.experimental import pallas as pl
from jax.experimental.pallas import tpu as pltpu

LRELU_SLOPE = 0.1
NEG_INF_FILL = -1e4       # VITS masked_fill value
LN_EPS = 1e-5             # VITS attentions.LayerNorm eps
WINDOW_SIZE = 10          # relative-attention window (latopia / RVC default)


def _t_tile(T, cap=512):
    # Full-T block for short sequences (any size allowed when equal to full dim),
    # otherwise a 512-row tile (multiple of 8) for pipelining / VMEM bounds.
    return T if T <= cap else cap


# ----------------------------- Pallas kernels -----------------------------

def embed_kernel(len_ref, phone_ref, pitch_ref, w_ref, b_ref, o_ref, *, scale, t_tile):
    # x = lrelu((phone @ W + b + emb_pitch[pitch]) * sqrt(H)) * x_mask
    b = pl.program_id(0)
    ti = pl.program_id(1)
    x = jnp.dot(phone_ref[0].astype(jnp.bfloat16), w_ref[...],
                preferred_element_type=jnp.float32)
    x = (x + b_ref[...] + pitch_ref[0]) * scale
    x = jnp.where(x >= 0.0, x, LRELU_SLOPE * x)               # LeakyReLU(0.1)
    row = ti * t_tile + jax.lax.broadcasted_iota(jnp.int32, (x.shape[0], 1), 0)
    o_ref[0] = jnp.where(row < len_ref[b], x, 0.0)            # encoder-entry x * x_mask


def matmul_bias_kernel(x_ref, w_ref, b_ref, o_ref):
    # fused QKV projection (or any linear over channels), bf16 MXU, f32 acc
    o_ref[0] = (jnp.dot(x_ref[0].astype(jnp.bfloat16), w_ref[...],
                        preferred_element_type=jnp.float32) + b_ref[...])


def attn_kernel(len_ref, qkv_q_ref, qkv_kv_ref, relk_ref, relv_ref, o_ref, *,
                n_heads, d_head, hidden, window, tq):
    # One (batch, query-tile) per program; heads are a static loop over channel
    # slices of the fused (T, 3H) QKV block.  Relative-position terms are
    # computed against the raw (2W+1, d) tables (no (T,T,d) materialization).
    b = pl.program_id(0)
    qi = pl.program_id(1)
    q0 = qi * tq
    T = qkv_kv_ref.shape[1]
    L = len_ref[b]
    scale = 1.0 / math.sqrt(d_head)

    row = q0 + jax.lax.broadcasted_iota(jnp.int32, (tq, T), 0)   # abs query index
    col = jax.lax.broadcasted_iota(jnp.int32, (tq, T), 1)        # abs key index
    valid = (row < L) & (col < L)
    delta = col - row                                            # key - query offset

    n_rel = min(window, T - 1)
    r_lo, r_hi = window - n_rel, window + n_rel                  # reachable table rows

    qv = qkv_q_ref[0]                                            # (tq, 3H) f32
    kv = qkv_kv_ref[0]                                           # (T, 3H)  f32
    relk = relk_ref[...]                                         # (2W+1, d) bf16
    relv = relv_ref[...]

    outs = []
    for h in range(n_heads):
        q = qv[:, h * d_head:(h + 1) * d_head] * scale
        k = kv[:, hidden + h * d_head: hidden + (h + 1) * d_head]
        v = kv[:, 2 * hidden + h * d_head: 2 * hidden + (h + 1) * d_head]
        qb = q.astype(jnp.bfloat16)

        scores = jax.lax.dot_general(qb, k.astype(jnp.bfloat16),
                                     (((1,), (1,)), ((), ())),
                                     preferred_element_type=jnp.float32)   # (tq, T)

        # relative-key bias: band[i, r] = (q/sqrt(d)) . rel_k[r]   (MXU),
        # then scatter band column r onto diagonal j - i == r - W.
        band = jax.lax.dot_general(qb, relk, (((1,), (1,)), ((), ())),
                                   preferred_element_type=jnp.float32)     # (tq, 2W+1)
        rel_bias = jnp.zeros((tq, T), jnp.float32)
        for r in range(r_lo, r_hi + 1):
            rel_bias = rel_bias + jnp.where(delta == (r - window),
                                            band[:, r:r + 1], 0.0)
        scores = scores + rel_bias

        # VITS masked_fill(mask == 0, -1e4).  NOTE: rows with i >= length get a
        # uniform softmax (finite garbage) exactly like the PyTorch reference;
        # they are zeroed later by x_mask.
        scores = jnp.where(valid, scores, NEG_INF_FILL)
        m = jnp.max(scores, axis=-1, keepdims=True)
        p = jnp.exp(scores - m)
        p = p * pl.reciprocal(jnp.sum(p, axis=-1, keepdims=True), approx=True)

        out_h = jnp.dot(p.astype(jnp.bfloat16), v.astype(jnp.bfloat16),
                        preferred_element_type=jnp.float32)                 # (tq, d)

        # relative-value term: p_band[i, r] = p[i, i + r - W] (banded gather of p),
        # then p_band @ rel_v on the MXU.
        p_band = jnp.concatenate(
            [jnp.sum(jnp.where(delta == (r - window), p, 0.0),
                     axis=-1, keepdims=True)
             for r in range(r_lo, r_hi + 1)], axis=-1)                      # (tq, 2n+1)
        out_h = out_h + jnp.dot(p_band.astype(jnp.bfloat16),
                                relv[r_lo:r_hi + 1, :],
                                preferred_element_type=jnp.float32)
        outs.append(out_h)

    o_ref[0] = jnp.concatenate(outs, axis=-1)                    # lane-dense (tq, H)


def out_ln_kernel(attn_ref, x_ref, w_ref, b_ref, g_ref, beta_ref, o_ref):
    # y = attn @ Wo + bo ; x = LayerNorm(x + y)  (fused)
    y = jnp.dot(attn_ref[0].astype(jnp.bfloat16), w_ref[...],
                preferred_element_type=jnp.float32) + b_ref[...]
    z = x_ref[0] + y
    mean = jnp.mean(z, axis=-1, keepdims=True)
    zc = z - mean
    var = jnp.mean(zc * zc, axis=-1, keepdims=True)
    o_ref[0] = zc * jax.lax.rsqrt(var + LN_EPS) * g_ref[...] + beta_ref[...]


def ffn_ln_kernel(len_ref, x_ref, w1_ref, b1_ref, w2_ref, b2_ref, g_ref, beta_ref,
                  o_ref, pad1_ref, pad2_ref, *, ksize, pad_l):
    # Fused VITS FFN + residual + LayerNorm:
    #   y = conv2(pad(relu(conv1(pad(x*mask))) * mask)) * mask ; out = LN(x + y)
    # Convs are im2col matmuls; the padded views live in VMEM scratch.
    b = pl.program_id(0)
    T = x_ref.shape[1]
    L = len_ref[b]

    x = x_ref[0]                                                 # (T, H) f32
    row = jax.lax.broadcasted_iota(jnp.int32, (T, 1), 0)
    mask = (row < L).astype(jnp.float32)                         # (T, 1)

    # ---- conv1 (same padding) ----
    pad1_ref[...] = jnp.zeros(pad1_ref.shape, pad1_ref.dtype)
    pad1_ref[pad_l:pad_l + T, :] = x * mask
    xp = pad1_ref[...]
    xim = jnp.concatenate([xp[tau:tau + T] for tau in range(ksize)], axis=-1)
    h = jnp.dot(xim.astype(jnp.bfloat16), w1_ref[...],
                preferred_element_type=jnp.float32) + b1_ref[...]
    h = jnp.maximum(h, 0.0)                                      # relu
    # TODO(synk): dropout between the convs omitted — identity at inference.

    # ---- conv2 ----
    pad2_ref[...] = jnp.zeros(pad2_ref.shape, pad2_ref.dtype)
    pad2_ref[pad_l:pad_l + T, :] = h * mask
    hp = pad2_ref[...]
    him = jnp.concatenate([hp[tau:tau + T] for tau in range(ksize)], axis=-1)
    y = jnp.dot(him.astype(jnp.bfloat16), w2_ref[...],
                preferred_element_type=jnp.float32) + b2_ref[...]
    y = y * mask                                                 # FFN returns x * x_mask

    # ---- residual + LayerNorm ----
    z = x + y
    mean = jnp.mean(z, axis=-1, keepdims=True)
    zc = z - mean
    var = jnp.mean(zc * zc, axis=-1, keepdims=True)
    o_ref[0] = zc * jax.lax.rsqrt(var + LN_EPS) * g_ref[...] + beta_ref[...]


def final_proj_kernel(len_ref, x_ref, w_ref, b_ref, o_ref, *, t_tile):
    # stats = proj(x * x_mask) * x_mask   (encoder-exit mask + 1x1 conv + mask)
    b = pl.program_id(0)
    ti = pl.program_id(1)
    x = x_ref[0]
    row = ti * t_tile + jax.lax.broadcasted_iota(jnp.int32, (x.shape[0], 1), 0)
    mask = (row < len_ref[b]).astype(jnp.float32)
    xm = x * mask
    stats = jnp.dot(xm.astype(jnp.bfloat16), w_ref[...],
                    preferred_element_type=jnp.float32) + b_ref[...]
    o_ref[0] = stats * mask


# ----------------------------- pallas_call wrappers -----------------------------

def call_embed(lengths, phone, pitch_emb, w, b, scale):
    B, T, E = phone.shape
    H = w.shape[1]
    tT = _t_tile(T)
    return pl.pallas_call(
        partial(embed_kernel, scale=scale, t_tile=tT),
        out_shape=jax.ShapeDtypeStruct((B, T, H), jnp.float32),
        grid_spec=pltpu.PrefetchScalarGridSpec(
            num_scalar_prefetch=1,
            grid=(B, pl.cdiv(T, tT)),
            in_specs=[
                pl.BlockSpec((1, tT, E), lambda b, t, L: (b, t, 0)),
                pl.BlockSpec((1, tT, H), lambda b, t, L: (b, t, 0)),
                pl.BlockSpec((E, H), lambda b, t, L: (0, 0)),
                pl.BlockSpec((1, H), lambda b, t, L: (0, 0)),
            ],
            out_specs=pl.BlockSpec((1, tT, H), lambda b, t, L: (b, t, 0)),
        ),
        compiler_params=pltpu.CompilerParams(
            dimension_semantics=("parallel", "parallel")),
    )(lengths, phone, pitch_emb, w, b)


def call_matmul_bias(x, w, b):
    B, T, Cin = x.shape
    Cout = w.shape[1]
    tT = _t_tile(T)
    return pl.pallas_call(
        matmul_bias_kernel,
        out_shape=jax.ShapeDtypeStruct((B, T, Cout), jnp.float32),
        grid=(B, pl.cdiv(T, tT)),
        in_specs=[
            pl.BlockSpec((1, tT, Cin), lambda b, t: (b, t, 0)),
            pl.BlockSpec((Cin, Cout), lambda b, t: (0, 0)),
            pl.BlockSpec((1, Cout), lambda b, t: (0, 0)),
        ],
        out_specs=pl.BlockSpec((1, tT, Cout), lambda b, t: (b, t, 0)),
        compiler_params=pltpu.CompilerParams(
            dimension_semantics=("parallel", "parallel")),
    )(x, w, b)


def call_attention(lengths, qkv, relk, relv, n_heads, hidden):
    B, T, threeH = qkv.shape
    d_head = hidden // n_heads
    tq = T if T <= 256 else 256
    n_rel_rows = relk.shape[0]

    flops = int(4 * B * n_heads * T * T * d_head
                + 4 * B * n_heads * T * n_rel_rows * d_head)
    bytes_accessed = int(qkv.size * 4 * 2 + B * T * hidden * 4
                         + (relk.size + relv.size) * 2)
    cost = pl.CostEstimate(flops=flops,
                           transcendentals=int(B * n_heads * T * T),
                           bytes_accessed=bytes_accessed)

    return pl.pallas_call(
        partial(attn_kernel, n_heads=n_heads, d_head=d_head, hidden=hidden,
                window=(n_rel_rows - 1) // 2, tq=tq),
        out_shape=jax.ShapeDtypeStruct((B, T, hidden), jnp.float32),
        grid_spec=pltpu.PrefetchScalarGridSpec(
            num_scalar_prefetch=1,
            grid=(B, pl.cdiv(T, tq)),
            in_specs=[
                pl.BlockSpec((1, tq, threeH), lambda b, q, L: (b, q, 0)),   # Q view
                pl.BlockSpec((1, T, threeH), lambda b, q, L: (b, 0, 0)),    # K/V view
                pl.BlockSpec((n_rel_rows, d_head), lambda b, q, L: (0, 0)),
                pl.BlockSpec((n_rel_rows, d_head), lambda b, q, L: (0, 0)),
            ],
            out_specs=pl.BlockSpec((1, tq, hidden), lambda b, q, L: (b, q, 0)),
        ),
        compiler_params=pltpu.CompilerParams(
            dimension_semantics=("parallel", "parallel"),
            vmem_limit_bytes=48 * 1024 * 1024),
        cost_estimate=cost,
    )(lengths, qkv, qkv, relk, relv)


def call_out_ln(attn, x, w, b, g, beta):
    B, T, H = x.shape
    tT = _t_tile(T)
    return pl.pallas_call(
        out_ln_kernel,
        out_shape=jax.ShapeDtypeStruct((B, T, H), jnp.float32),
        grid=(B, pl.cdiv(T, tT)),
        in_specs=[
            pl.BlockSpec((1, tT, H), lambda b, t: (b, t, 0)),
            pl.BlockSpec((1, tT, H), lambda b, t: (b, t, 0)),
            pl.BlockSpec((H, H), lambda b, t: (0, 0)),
            pl.BlockSpec((1, H), lambda b, t: (0, 0)),
            pl.BlockSpec((1, H), lambda b, t: (0, 0)),
            pl.BlockSpec((1, H), lambda b, t: (0, 0)),
        ],
        out_specs=pl.BlockSpec((1, tT, H), lambda b, t: (b, t, 0)),
        compiler_params=pltpu.CompilerParams(
            dimension_semantics=("parallel", "parallel")),
    )(attn, x, w, b, g, beta)


def call_ffn_ln(lengths, x, w1, b1, w2, b2, g, beta, ksize):
    B, T, H = x.shape
    F = w1.shape[1]
    pad_l = (ksize - 1) // 2

    flops = int(4 * B * T * ksize * H * F)
    bytes_accessed = int(x.size * 4 * 2 + (w1.size + w2.size) * 2
                         + (b1.size + b2.size + g.size + beta.size) * 4)
    cost = pl.CostEstimate(flops=flops, transcendentals=0,
                           bytes_accessed=bytes_accessed)

    return pl.pallas_call(
        partial(ffn_ln_kernel, ksize=ksize, pad_l=pad_l),
        out_shape=jax.ShapeDtypeStruct((B, T, H), jnp.float32),
        grid_spec=pltpu.PrefetchScalarGridSpec(
            num_scalar_prefetch=1,
            grid=(B,),
            in_specs=[
                pl.BlockSpec((1, T, H), lambda b, L: (b, 0, 0)),
                pl.BlockSpec((ksize * H, F), lambda b, L: (0, 0)),
                pl.BlockSpec((1, F), lambda b, L: (0, 0)),
                pl.BlockSpec((ksize * F, H), lambda b, L: (0, 0)),
                pl.BlockSpec((1, H), lambda b, L: (0, 0)),
                pl.BlockSpec((1, H), lambda b, L: (0, 0)),
                pl.BlockSpec((1, H), lambda b, L: (0, 0)),
            ],
            out_specs=pl.BlockSpec((1, T, H), lambda b, L: (b, 0, 0)),
            scratch_shapes=[
                pltpu.VMEM((T + ksize - 1, H), jnp.float32),
                pltpu.VMEM((T + ksize - 1, F), jnp.float32),
            ],
        ),
        compiler_params=pltpu.CompilerParams(
            dimension_semantics=("parallel",),
            vmem_limit_bytes=48 * 1024 * 1024),
        cost_estimate=cost,
    )(lengths, x, w1, b1, w2, b2, g, beta)


def call_final_proj(lengths, x, w, b):
    B, T, H = x.shape
    C = w.shape[1]
    tT = _t_tile(T)
    return pl.pallas_call(
        partial(final_proj_kernel, t_tile=tT),
        out_shape=jax.ShapeDtypeStruct((B, T, C), jnp.float32),
        grid_spec=pltpu.PrefetchScalarGridSpec(
            num_scalar_prefetch=1,
            grid=(B, pl.cdiv(T, tT)),
            in_specs=[
                pl.BlockSpec((1, tT, H), lambda b, t, L: (b, t, 0)),
                pl.BlockSpec((H, C), lambda b, t, L: (0, 0)),
                pl.BlockSpec((1, C), lambda b, t, L: (0, 0)),
            ],
            out_specs=pl.BlockSpec((1, tT, C), lambda b, t, L: (b, t, 0)),
        ),
        compiler_params=pltpu.CompilerParams(
            dimension_semantics=("parallel", "parallel")),
    )(lengths, x, w, b)


# ----------------------------- parameters -----------------------------

def init_params(key, emb_channels, hidden, filter_channels, n_heads, n_layers,
                kernel_size, out_channels, window_size=WINDOW_SIZE):
    d = hidden // n_heads
    keys = iter(jax.random.split(key, 8 + 16 * n_layers))
    bf = jnp.bfloat16

    def nrm(shape, scale=0.1, dtype=jnp.float32):
        return (jax.random.normal(next(keys), shape, jnp.float32) * scale).astype(dtype)

    params = {
        "emb_phone_w": nrm((emb_channels, hidden), dtype=bf),
        "emb_phone_b": nrm((1, hidden)),
        "emb_pitch": nrm((256, hidden)),
        "proj_w": nrm((hidden, 2 * out_channels), dtype=bf),
        "proj_b": nrm((1, 2 * out_channels)),
        "layers": [],
    }
    for _ in range(n_layers):
        params["layers"].append({
            # fused QKV projection weight
            "wqkv": nrm((hidden, 3 * hidden), dtype=bf),
            "bqkv": nrm((1, 3 * hidden)),
            "wo": nrm((hidden, hidden), dtype=bf),
            "bo": nrm((1, hidden)),
            # relative-position tables (heads shared, as in VITS default)
            "rel_k": nrm((2 * window_size + 1, d), d ** -0.5, dtype=bf),
            "rel_v": nrm((2 * window_size + 1, d), d ** -0.5, dtype=bf),
            "ln1_g": jnp.ones((1, hidden), jnp.float32),
            "ln1_b": jnp.zeros((1, hidden), jnp.float32),
            # conv weights pre-laid-out for im2col: (k*Cin, Cout), row = tap*Cin + c
            "w1": nrm((kernel_size * hidden, filter_channels), dtype=bf),
            "b1": nrm((1, filter_channels)),
            "w2": nrm((kernel_size * filter_channels, hidden), dtype=bf),
            "b2": nrm((1, hidden)),
            "ln2_g": jnp.ones((1, hidden), jnp.float32),
            "ln2_b": jnp.zeros((1, hidden), jnp.float32),
        })
    return params


# ----------------------------- forward -----------------------------

def text_encoder_forward(params, phone, pitch, lengths, *,
                         out_channels, hidden_channels, n_heads, kernel_size):
    B, T, _ = phone.shape
    H = hidden_channels
    lengths = lengths.astype(jnp.int32)

    if pitch is None:
        pitch_emb = jnp.zeros((B, T, H), jnp.float32)
    else:
        pitch_emb = jnp.take(params["emb_pitch"], pitch, axis=0)   # embedding gather (glue)

    # emb_phone + emb_pitch, * sqrt(H), LeakyReLU(0.1), * x_mask — one fused kernel
    x = call_embed(lengths, phone, pitch_emb, params["emb_phone_w"],
                   params["emb_phone_b"], math.sqrt(H))             # (B, T, H)

    for lp in params["layers"]:
        # --- relative-position multi-head self-attention ---
        qkv = call_matmul_bias(x, lp["wqkv"], lp["bqkv"])           # (B, T, 3H)
        attn = call_attention(lengths, qkv, lp["rel_k"], lp["rel_v"],
                              n_heads, H)                           # (B, T, H)
        # TODO(synk): attention dropout omitted — identity at inference.
        x = call_out_ln(attn, x, lp["wo"], lp["bo"], lp["ln1_g"], lp["ln1_b"])

        # --- fused FFN (conv-relu-conv, masked as in VITS) + residual + LN2 ---
        x = call_ffn_ln(lengths, x, lp["w1"], lp["b1"], lp["w2"], lp["b2"],
                        lp["ln2_g"], lp["ln2_b"], kernel_size)

    stats = call_final_proj(lengths, x, params["proj_w"], params["proj_b"])
    m = stats[..., :out_channels]
    logs = stats[..., out_channels:]

    mask = (jnp.arange(T)[None, :] < lengths[:, None]).astype(jnp.float32)

    # PyTorch layouts: m / logs (B, out, T), x_mask (B, 1, T)
    return (jnp.transpose(m, (0, 2, 1)),
            jnp.transpose(logs, (0, 2, 1)),
            mask[:, None, :])


# ----------------------------- main -----------------------------

if __name__ == "__main__":
    B, T = 2, 8
    emb_channels = 16
    hidden_channels = 32
    filter_channels = 64
    n_heads = 2
    n_layers = 2
    kernel_size = 3
    out_channels = 12

    key = jax.random.PRNGKey(0)
    k_params, k_phone, k_pitch = jax.random.split(key, 3)

    params = init_params(k_params, emb_channels, hidden_channels, filter_channels,
                         n_heads, n_layers, kernel_size, out_channels)

    phone = jax.random.normal(k_phone, (B, T, emb_channels), jnp.float32)
    pitch = jax.random.randint(k_pitch, (B, T), 0, 256, jnp.int32)
    lengths = jnp.array([8, 5], jnp.int32)

    m, logs, x_mask = text_encoder_forward(
        params, phone, pitch, lengths,
        out_channels=out_channels, hidden_channels=hidden_channels,
        n_heads=n_heads, kernel_size=kernel_size)

    jax.block_until_ready((m, logs, x_mask))
    assert m.shape == (B, out_channels, T)
    assert logs.shape == (B, out_channels, T)
    assert x_mask.shape == (B, 1, T)
    assert bool(jnp.all(jnp.isfinite(m))) and bool(jnp.all(jnp.isfinite(logs)))
    print("KERNEL_OK")
</pallas_src>

<mosaic_0001>
module attributes {stable_mosaic.version = 11 : i64} {
  func.func @embed_kernel(%arg0: i32, %arg1: i32, %arg2: memref<2xi32, #tpu.memory_space<smem>>, %arg3: memref<1x8x16xf32, #tpu.memory_space<vmem>>, %arg4: memref<1x8x32xf32, #tpu.memory_space<vmem>>, %arg5: memref<16x32xbf16, #tpu.memory_space<vmem>>, %arg6: memref<1x32xf32, #tpu.memory_space<vmem>>, %arg7: memref<1x8x32xf32, #tpu.memory_space<vmem>>) attributes {dimension_semantics = [#tpu.dimension_semantics<parallel>, #tpu.dimension_semantics<parallel>], iteration_bounds = array<i64: 2, 1>, scalar_prefetch = 1 : i64, scratch_operands = 0 : i64, tpu.core_type = #tpu.core_type<tc>, window_params = [{transform_indices = @transform_0, window_bounds = array<i64: 1, 8, 16>}, {transform_indices = @transform_1, window_bounds = array<i64: 1, 8, 32>}, {pipeline_mode = #tpu.pipeline_mode<synchronous>, transform_indices = @transform_2, window_bounds = array<i64: 16, 32>}, {pipeline_mode = #tpu.pipeline_mode<synchronous>, transform_indices = @transform_3, window_bounds = array<i64: 1, 32>}, {transform_indices = @transform_4, window_bounds = array<i64: 1, 8, 32>}]} {
    %c0 = arith.constant 0 : index
    %c0_0 = arith.constant 0 : index
    %c0_1 = arith.constant 0 : index
    %0 = vector.load %arg3[%c0, %c0_0, %c0_1] : memref<1x8x16xf32, #tpu.memory_space<vmem>>, vector<1x8x16xf32>
    %1 = vector.shape_cast %0 : vector<1x8x16xf32> to vector<8x16xf32>
    %2 = arith.truncf %1 : vector<8x16xf32> to vector<8x16xbf16>
    %c0_2 = arith.constant 0 : index
    %c0_3 = arith.constant 0 : index
    %3 = vector.load %arg5[%c0_2, %c0_3] : memref<16x32xbf16, #tpu.memory_space<vmem>>, vector<16x32xbf16>
    %cst = arith.constant dense<0.000000e+00> : vector<8x32xf32>
    %4 = tpu.matmul %2, %3, %cst {dimension_numbers = #tpu.dot_dimension_numbers<[1], [0], [0], [1], [0, 0, 1, 1], [], []>} : vector<8x16xbf16>, vector<16x32xbf16>, vector<8x32xf32> -> vector<8x32xf32>
    %c0_4 = arith.constant 0 : index
    %c0_5 = arith.constant 0 : index
    %5 = vector.load %arg6[%c0_4, %c0_5] : memref<1x32xf32, #tpu.memory_space<vmem>>, vector<1x32xf32>
    %6 = vector.broadcast %5 : vector<1x32xf32> to vector<8x32xf32>
    %7 = arith.addf %4, %6 : vector<8x32xf32>
    %c0_6 = arith.constant 0 : index
    %c0_7 = arith.constant 0 : index
    %c0_8 = arith.constant 0 : index
    %8 = vector.load %arg4[%c0_6, %c0_7, %c0_8] : memref<1x8x32xf32, #tpu.memory_space<vmem>>, vector<1x8x32xf32>
    %9 = vector.shape_cast %8 : vector<1x8x32xf32> to vector<8x32xf32>
    %10 = arith.addf %7, %9 : vector<8x32xf32>
    %cst_9 = arith.constant 5.65685415 : f32
    %11 = vector.broadcast %cst_9 : f32 to vector<8x32xf32>
    %12 = arith.mulf %10, %11 : vector<8x32xf32>
    %cst_10 = arith.constant 0.000000e+00 : f32
    %13 = vector.broadcast %cst_10 : f32 to vector<8x32xf32>
    %14 = arith.cmpf oge, %12, %13 : vector<8x32xf32>
    %cst_11 = arith.constant 1.000000e-01 : f32
    %15 = vector.broadcast %cst_11 : f32 to vector<8x32xf32>
    %16 = arith.mulf %15, %12 : vector<8x32xf32>
    %17 = arith.select %14, %12, %16 : vector<8x32xi1>, vector<8x32xf32>
    %c8_i32 = arith.constant 8 : i32
    %18 = arith.muli %arg1, %c8_i32 : i32
    %19 = tpu.iota {dimensions = array<i32: 0>} : vector<8x1xi32>
    %20 = vector.broadcast %18 : i32 to vector<8x1xi32>
    %21 = arith.addi %20, %19 : vector<8x1xi32>
    %22 = arith.index_cast %arg0 : i32 to index
    %23 = memref.load %arg2[%22] : memref<2xi32, #tpu.memory_space<smem>>
    %24 = vector.broadcast %23 : i32 to vector<8x1xi32>
    %25 = arith.cmpi slt, %21, %24 : vector<8x1xi32>
    %cst_12 = arith.constant 0.000000e+00 : f32
    %26 = vector.shape_cast %25 : vector<8x1xi1> to vector<8x1xi1>
    %27 = vector.broadcast %26 : vector<8x1xi1> to vector<8x32xi1>
    %28 = vector.broadcast %cst_12 : f32 to vector<8x32xf32>
    %29 = arith.select %27, %17, %28 : vector<8x32xi1>, vector<8x32xf32>
    %c0_13 = arith.constant 0 : index
    %c0_14 = arith.constant 0 : index
    %c0_15 = arith.constant 0 : index
    %30 = vector.load %arg7[%c0_13, %c0_14, %c0_15] : memref<1x8x32xf32, #tpu.memory_space<vmem>>, vector<1x8x32xf32>
    %31 = vector.shape_cast %30 : vector<1x8x32xf32> to vector<8x32xf32>
    %32 = vector.shape_cast %29 : vector<8x32xf32> to vector<1x8x32xf32>
    tpu.vector_store %arg7[%c0_13, %c0_14, %c0_15], %32 {strides = array<i32>} : memref<1x8x32xf32, #tpu.memory_space<vmem>>, vector<1x8x32xf32>,
    return
  }
  func.func @transform_0(%arg0: i32, %arg1: i32, %arg2: memref<2xi32, #tpu.memory_space<smem>>) -> (i32, i32, i32) {
    %c0_i32 = arith.constant 0 : i32
    %c0_i32_0 = arith.constant 0 : i32
    return %arg0, %arg1, %c0_i32 : i32, i32, i32
  }
  func.func @transform_1(%arg0: i32, %arg1: i32, %arg2: memref<2xi32, #tpu.memory_space<smem>>) -> (i32, i32, i32) {
    %c0_i32 = arith.constant 0 : i32
    %c0_i32_0 = arith.constant 0 : i32
    return %arg0, %arg1, %c0_i32 : i32, i32, i32
  }
  func.func @transform_2(%arg0: i32, %arg1: i32, %arg2: memref<2xi32, #tpu.memory_space<smem>>) -> (i32, i32) {
    %c0_i32 = arith.constant 0 : i32
    %c0_i32_0 = arith.constant 0 : i32
    %c0_i32_1 = arith.constant 0 : i32
    return %c0_i32, %c0_i32_0 : i32, i32
  }
  func.func @transform_3(%arg0: i32, %arg1: i32, %arg2: memref<2xi32, #tpu.memory_space<smem>>) -> (i32, i32) {
    %c0_i32 = arith.constant 0 : i32
    %c0_i32_0 = arith.constant 0 : i32
    %c0_i32_1 = arith.constant 0 : i32
    return %c0_i32, %c0_i32_0 : i32, i32
  }
  func.func @transform_4(%arg0: i32, %arg1: i32, %arg2: memref<2xi32, #tpu.memory_space<smem>>) -> (i32, i32, i32) {
    %c0_i32 = arith.constant 0 : i32
    %c0_i32_0 = arith.constant 0 : i32
    return %arg0, %arg1, %c0_i32 : i32, i32, i32
  }
}

</mosaic_0001>

<bundles_post_ra>
// kernel: tpu_custom_call.1
= control target key start
LH: loop header
LB: loop body
LE: loop exit
PB: predicated region body
PF: predicated region fallthrough
CT: control target
= control target key end

     0   :  { %s1013_s0 = inlined_call_operand.hbm [shape: s32[2], index: 0, kind: input, shape index: {}]   ;;  %s1014_s1 = inlined_call_operand.hbm [shape: f32[2,8,16], index: 1, kind: input, shape index: {}]   ;;  %s1015_s2 = inlined_call_operand.hbm [shape: f32[2,8,32], index: 2, kind: input, shape index: {}]   ;;  %s1016_s3 = inlined_call_operand.vmem [shape: bf16[16,32], index: 3, kind: input, shape index: {}]   ;;  %s1017_s4 = inlined_call_operand.vmem [shape: f32[1,32], index: 4, kind: input, shape index: {}]   ;;  %s1018_s5 = inlined_call_operand.hbm [shape: f32[2,8,32], index: 5, kind: output, shape index: {}]  }
   0x1   :  { %s573_s20 = scalar_lea.hbm %s1013_s0, 16 }
   0x2   :  { %p574_p0 = scmp.ne.s32.totalorder %s1013_s0, %s573_s20  ;;  %p577_p1 = scmp.lt.u32.totalorder %s573_s20, %s1013_s0 }
   0x4   :  { %p579_p2 = pnand %p577_p1, %p574_p0 }
   0x6   :  { %582 = shalt.err (!%p579_p2)  }
   0x7   :  { %s733_s25 = smov [#allocation3]  }
   0x8   :  { %11 = dma.hbm_to_smem %s1013_s0, 16, %s733_s25, [#allocation2] }
   0x9   :  { %695 = dma.done.wait [#allocation2], 16 }
   0xa   :  { %696 = vsyncadd [#allocation2], 4294967280 }
   0xb   :  { %13 = sfence }
   0xc   :  { %14 = vsyncpa [#allocation5], 0 }
   0xd   :  { %16 = vsyncpa [#allocation5 + $0x1], 0 }
   0xe   :  { %17 = vsyncpa [#allocation8], 0 }
   0xf   :  { %19 = vsyncpa [#allocation8 + $0x1], 0 }
  0x10   :  { %20 = vsyncpa [#allocation6], 0 }
  0x11   :  { %22 = vsyncpa [#allocation6 + $0x1], 0  ;;  %s781_s28 = smov 0   ;;  %s783_s29 = smov 0  }
  0x12   :  { %s785_s30 = smov 0   ;;  %s787_s6 = smov 0  }
  0x13   :  { %s789_s7 = smov 0   ;;  %s791_s0 = smov 0  }
  0x14 LB: > { %s475_s8 = sadd.s32 4294967295, %s731_s0   ;;  %s476_s9 = sadd.s32 4294967294, %s731_s0   ;;  %s731_s0 = sphi %s791_s0, %s28_s0   ;;  %s727_s7 = sphi %s789_s7, %s1038_s7   ;;  %s723_s6 = sphi %s787_s6, %s1037_s6   ;;  %s719_s30 = sphi %s785_s30, %s1036_s30   ;;  %s715_s29 = sphi %s783_s29, %s1035_s29   ;;  %s711_s28 = sphi %s781_s28, %s1034_s28  }
  0x15   : > { %s40_s10 = sadd.s32 1, %s727_s7  ;;  %s49_s11 = sadd.s32 1, %s719_s30 }
  0x16   : > { %p42_p3 = scmp.ge.s32.totalorder %s40_s10, 2  ;;  %p56_p4 = scmp.ne.s32.totalorder %s719_s30, %s715_s29 }
  0x17   : > { %p57_p5 = scmp.eq.s32.totalorder %s731_s0, 0  ;;  %p62_p6 = scmp.ne.s32.totalorder %s715_s29, %s711_s28 }
  0x18   : > { %s1040_s10 = smov (%p42_p3, %s40_s10), 0  ;;  %p63_p8 = scmp.eq.s32.totalorder %s475_s8, 0 }
  0x19   : > { %p822_p7 = por %p57_p5, %p56_p4  ;;  %s44_s13 = ssub.s32 %s727_s7, %s1040_s10 }
  0x1a   : > { %p158_p9 = scmp.eq.s32.totalorder %s475_s8, 1  ;;  %p47_p10 = scmp.eq.s32.totalorder %s44_s13, 0 }
  0x1b   : > { %p828_p11 = por %p63_p8, %p62_p6  ;;  %p164_p13 = scmp.eq.s32.totalorder %s476_s9, 1 }
  0x1c   : > { %p832_p12 = por %p158_p9, %p56_p4  ;;  %p519_p2 = scmp.lt.s32.totalorder %s731_s0, 2 }
  0x1d   : > { %s1022_s14 = scalar_select %p828_p11, 1, 0 }
  0x1e   : > { %s1023_s15 = scalar_select %p832_p12, 1, 0 }
  0x1f   : > { %s837_s16 = scalar_select %p47_p10, %s719_s30, %s49_s11  }
  0x20   : > { %p839_p0 = por %p164_p13, %p62_p6  ;;  %s846_s18 = sand.u32 1, %s719_s30  }
  0x21   : > { %s479_s19 = sshll.u32 %s846_s18, 3  ;;  %s480_s20 = sshll.u32 %s727_s7, 7 }
  0x22   : > { %s1024_s17 = scalar_select %p839_p0, 1, 0 }
  0x23   : > { %s855_s23 = scalar_lea.hbm %s1014_s1, %s480_s20  ;;  %s194_s24 = scalar_lea.vmem [#allocation4], %s479_s19 }
  0x24   : > { %s202_s25 = sshll.u32 %s194_s24, 4  ;;  %p863_p3 = pnand %p519_p2, %p822_p7  ;;  %s859_s25 = int_to_ptr.vmem [resolvable:$true] %s202_s25 }
  0x25   : > { %s191_s27 = scalar_lea.sflag [#allocation5], %s846_s18  ;;  %s583_s8 = scalar_lea.hbm %s855_s23, 128 }
  0x26   : > { %p584_p6 = scmp.ne.s32.totalorder %s855_s23, %s583_s8  ;;  %p585_p8 = pneg %p863_p3 }
  0x27   : > { %s588_s12 = scalar_lea.hbm %s1014_s1, 256  ;;  %p589_p7 = scmp.lt.u32.totalorder %s855_s23, %s1014_s1 }
  0x28   : > { %p586_p9 = pnand %p585_p8, %p584_p6  ;;  %p590_p13 = scmp.lt.u32.totalorder %s588_s12, %s583_s8 }
  0x29   : > { %p592_p1 = scmp.lt.u32.totalorder %s583_s8, %s855_s23 }
  0x2a   : > { %p587_p10 = pneg %p586_p9  ;;  %p591_p2 = por %p590_p13, %p589_p7 }
  0x2c   : > { %p593_p4 = por %p592_p1, %p591_p2 }
  0x2e   : > { %p594_p5 = pnand %p593_p4, %p587_p10 }
  0x30   : > { %597 = shalt.err (!%p594_p5)
}
  0x31   : > { %s598_s22 = scalar_lea.vmem %s859_s25, 128  ;;  %s734_s24 = smov [#allocation4]  }
  0x32   : > { %p599_p6 = scmp.ne.s32.totalorder %s859_s25, %s598_s22  ;;  %s603_s9 = sshll.u32 %s734_s24, 4  ;;  %s604_s9 = int_to_ptr.vmem [resolvable:$false] %s603_s9 }
  0x33   : > { %s605_s11 = scalar_lea.vmem %s604_s9, 256  ;;  %p606_p12 = scmp.lt.s32.totalorder %s859_s25, %s604_s9 }
  0x34   : > { %p601_p9 = pnand %p599_p6, %p585_p8  ;;  %p607_p7 = scmp.lt.s32.totalorder %s605_s11, %s598_s22 }
  0x36   : > { %p602_p0 = pneg %p601_p9  ;;  %p608_p13 = por %p607_p7, %p606_p12 }
  0x38   : > { %p609_p1 = pnand %p608_p13, %p602_p0 }
  0x3a   : > { %612 = shalt.err (!%p609_p1)
}
  0x3b   : > { %511 = dma.hbm_to_vmem [thread:$0]  (!%p863_p3), %s855_s23, 128, %s859_s25, %s191_s27  }
  0x3c   : > { %p1026_p4 = scmp.lt.s32.totalorder %s731_s0, 3  ;;  %p1027_p5 = scmp.ge.s32.totalorder %s731_s0, 1 }
  0x3d   : > { %s908_s21 = scalar_lea.hbm %s1015_s2, %s480_s20  ;;  %s213_s22 = scalar_lea.vmem [#allocation7], %s479_s19 }
  0x3e   : > { %p899_p10 = pnand %p1027_p5, %p1026_p4  ;;  %s221_s24 = sshll.u32 %s213_s22, 4  ;;  %s222_s24 = int_to_ptr.vmem [resolvable:$true] %s221_s24 }
  0x3f   : > { %s210_s23 = scalar_lea.sflag [#allocation8], %s846_s18  ;;  %s613_s25 = scalar_lea.hbm %s908_s21, 128 }
  0x40   : > { %s1028_s8 = scalar_select %p899_p10, 1, 0 }
  0x41   : > { %p614_p12 = scmp.ne.s32.totalorder %s908_s21, %s613_s25  ;;  %s618_s20 = scalar_lea.hbm %s1015_s2, 256 }
  0x42   : > { %p619_p6 = scmp.lt.u32.totalorder %s908_s21, %s1015_s2  ;;  %p620_p9 = scmp.lt.u32.totalorder %s618_s20, %s613_s25 }
  0x43   : > { %p616_p0 = pnand %p614_p12, %p585_p8  ;;  %p622_p13 = scmp.lt.u32.totalorder %s613_s25, %s908_s21 }
  0x44   : > { %p621_p7 = por %p620_p9, %p619_p6 }
  0x45   : > { %p617_p2 = pneg %p616_p0 }
  0x46   : > { %p623_p1 = por %p622_p13, %p621_p7 }
  0x48   : > { %p624_p4 = pnand %p623_p1, %p617_p2 }
  0x4a   : > { %627 = shalt.err (!%p624_p4)
}
  0x4b   : > { %s628_s18 = scalar_lea.vmem %s222_s24, 128  ;;  %s735_s19 = smov [#allocation7]  }
  0x4c   : > { %p629_p5 = scmp.ne.s32.totalorder %s222_s24, %s628_s18  ;;  %s633_s13 = sshll.u32 %s735_s19, 4  ;;  %s634_s13 = int_to_ptr.vmem [resolvable:$false] %s633_s13 }
  0x4d   : > { %s635_s22 = scalar_lea.vmem %s634_s13, 256  ;;  %p636_p11 = scmp.lt.s32.totalorder %s222_s24, %s634_s13 }
  0x4e   : > { %p631_p12 = pnand %p629_p5, %p585_p8  ;;  %p637_p10 = scmp.lt.s32.totalorder %s635_s22, %s628_s18 }
  0x50   : > { %p632_p0 = pneg %p631_p12  ;;  %p638_p6 = por %p637_p10, %p636_p11 }
  0x52   : > { %p639_p9 = pnand %p638_p6, %p632_p0 }
  0x54   : > { %642 = shalt.err (!%p639_p9)
}
  0x55   : > { %514 = dma.hbm_to_vmem [thread:$0]  (!%p863_p3), %s908_s21, 128, %s222_s24, %s210_s23  }
  0x56   : > { %p1029_p2 = scmp.ne.s32.totalorder %s1028_s8, 0 }
  0x57   : > { %s935_s25 = sand.u32 (!%p1029_p2), 1, %s715_s29   ;;  %p1030_p11 = scmp.ne.s32.totalorder (!%p1029_p2), %s1022_s14, 0 }
  0x58   : > { %230 = sbr.rel (%p1029_p2) target bundleno = 339 (0x153), region = 36  ;;  %s938_s27 = sshll.u32 (!%p1029_p2), %s935_s25, 3 }
  0x59   : > { %s233_s9 = scalar_lea.sflag (!%p1029_p2), [#allocation5], %s935_s25  ;;  %s236_s20 = scalar_lea.vmem (!%p1029_p2), [#allocation4], %s938_s27 }
  0x5f   : > { %698 = dma.done.wait (%p1030_p11), %s233_s9, 128  }
  0x60   : > { %700 = vsyncadd (%p1030_p11), %s233_s9, 4294967168  ;;  %s242_s26 = scalar_lea.sflag [#allocation8], %s935_s25  ;;  %s245_s8 = scalar_lea.vmem [#allocation7], %s938_s27 }
  0x61   : > { %702 = dma.done.wait (%p1030_p11), %s242_s26, 128  }
  0x62   : > { %704 = vsyncadd (%p1030_p11), %s242_s26, 4294967168  ;;  %v736_v0 = vmov 0.0   ;;  %vm737_vm0 = vmmov 0   ;;  %v572_v1 = vld [vmem:[%s1016_s3] sm:$0xff]   ;;  %v276_v2 = vld [vmem:[%s236_s20] sm:$0xff]  ;;  %vm293_vm1 = vcmask 130048   ;;  %v344_v5 = vlaneseq }
  0x63   : > { %496 = vmatprep.subr.bf16.mxu0 %v736_v0  ;;  %498 = vmatprep.mubr.msk.bf16.mxu0 %vm737_vm0, %v736_v0  ;;  %v277_v3 = vpack.c.bf16 %v276_v2, %v276_v2  ;;  %s348_s23 = sld [smem:[#allocation3 + %s723_s6]]  ;;  %v487_v4 = vld [vmem:[%s1017_s4] ss:$0 sm:$0xff]  ;;  %s491_s12 = sshll.u32 %s723_s6, 7  ;;  %vm354_vm4 = vcmask 261120  }
  0x64   : > { %497 = vmatpush3.bf16.msra.mxu0 %v572_v1  ;;  %v337_v7 = vld [vmem:[%s245_s8] sm:$0xff]  ;;  %v345_v12 = vshrl.u32 %v344_v5, 7  ;;  %s274_s18 = scalar_lea.vmem [#allocation9], %s938_s27  ;;  %s964_s9 = scalar_lea.hbm %s1018_s5, %s491_s12 }
  0x65   : > { %s371_s19 = sshll.u32 %s274_s18, 4  ;;  %s357_s6 = scalar_lea.sflag [#allocation6], %s935_s25  ;;  %s966_s19 = int_to_ptr.vmem [resolvable:$true] %s371_s19 }
  0x66   : > { %s643_s27 = scalar_lea.vmem %s966_s19, 128  ;;  %p1031_p8 = scmp.ne.s32.totalorder %s1023_s15, 0 }
  0x67   : > { %499 = vmatmul.mubr.msk.bf16.vlgmr.msra.gmra.mrb[0].mxu0 %vm293_vm1, %v277_v3  ;;  %p644_p3 = scmp.ne.s32.totalorder %s966_s19, %s643_s27  ;;  %s738_s20 = smov [#allocation9]  }
  0x68   : > { %s647_s26 = sshll.u32 %s738_s20, 4  ;;  %s648_s26 = int_to_ptr.vmem [resolvable:$false] %s647_s26 }
  0x69   : > { %v349_v14 = vstv %s348_s23  ;;  %p645_p10 = pnand %p644_p3, %p1031_p8  ;;  %s649_s8 = scalar_lea.vmem %s648_s26, 256 }
  0x6a   : > { %vm350_vm3 = vcmp.lt.s32.totalorder %v345_v12, %v349_v14  ;;  %p650_p13 = scmp.lt.s32.totalorder %s966_s19, %s648_s26  ;;  %p651_p1 = scmp.lt.s32.totalorder %s649_s8, %s643_s27 }
  0x6b   : > { %p646_p7 = pneg %p645_p10 }
  0x6c   : > { %p652_p4 = por %p651_p1, %p650_p13 }
  0x6e   : > { %p653_p5 = pnand %p652_p4, %p646_p7 }
 0x13a   : > { %v331_v6 = vpop.f32.mrb[0].mxu0 }
 0x13b   : > { %v332_v8 = vadd.f32 %v487_v4, %v331_v6  ;;  %v500_v9 = vpop.f32.mrb[1].mxu0 }
 0x13c   : > { %v334_v10 = vpop.f32.mrb[2].mxu0 }
 0x13d   : > { %v338_v11 = vadd.f32 %v337_v7, %v332_v8  ;;  %v501_v13 = vpop.f32.mrb[3].mxu0 }
 0x13f   : > { %v339_v15 = vmul.f32 5.656854, %v338_v11 }
 0x141   : > { %vm340_vm2 = vcmp.ge.f32.partialorder %v339_v15, 0.0  ;;  %v341_v16 = vmul.f32 0.1, %v339_v15 }
 0x143   : > { %v342_v17 = vsel %vm340_vm2, %v339_v15, %v341_v16 }
 0x144   : > { %v353_v18 = vsel %vm350_vm3, %v342_v17, 0.0 }
 0x145   : > { %355 = vst.msk [vmem:[%s274_s18] sm:$0xff] %vm354_vm4, %v353_v18 }
 0x146   : > { %656 = shalt.err (!%p653_p5)
}
 0x147   : > { %s657_s25 = scalar_lea.hbm %s964_s9, 128  ;;  %s661_s23 = scalar_lea.hbm %s1018_s5, 256 }
 0x148   : > { %p658_p12 = scmp.ne.s32.totalorder %s964_s9, %s657_s25  ;;  %p662_p9 = scmp.lt.u32.totalorder %s964_s9, %s1018_s5 }
 0x149   : > { %p663_p2 = scmp.lt.u32.totalorder %s661_s23, %s657_s25  ;;  %p665_p3 = scmp.lt.u32.totalorder %s657_s25, %s964_s9 }
 0x14a   : > { %p659_p0 = pnand %p658_p12, %p1031_p8 }
 0x14b   : > { %p664_p11 = por %p663_p2, %p662_p9 }
 0x14c   : > { %p660_p6 = pneg %p659_p0 }
 0x14d   : > { %p666_p10 = por %p665_p3, %p664_p11 }
 0x14f   : > { %p667_p7 = pnand %p666_p10, %p660_p6 }
 0x151   : > { %670 = shalt.err (!%p667_p7)
}
 0x152   : > { %506 = dma.vmem_to_hbm [thread:$0]  (%p1031_p8), %s966_s19, 128, %s964_s9, %s357_s6  }
 0x153 PF: > { %s383_s12 = sand.u32 1, %s711_s28   ;;  %p1032_p13 = scmp.ne.s32.totalorder %s1024_s17, 0 }
 0x154   : > { %p1033_p1 = scmp.ge.s32.totalorder %s731_s0, 2  ;;  %s384_s18 = scalar_lea.sflag [#allocation6], %s383_s12 }
 0x156   : > { %p516_p4 = pnand %p1033_p1, %p1032_p13 }
 0x158   : > { %706 = dma.done.wait (!%p516_p4), %s384_s18, 128  }
 0x159   : > { %708 = vsyncadd (!%p516_p4), %s384_s18, 4294967168  ;;  %s28_s0 = sadd.s32 1, %s731_s0   ;;  %s1034_s28 = smov %s715_s29 }
 0x15a   : > { %p25_p5 = scmp.ge.s32.totalorder %s28_s0, 4   ;;  %s1035_s29 = smov %s719_s30 }
 0x15b   : > { %s1036_s30 = smov %s837_s16  ;;  %s1037_s6 = smov %s727_s7 }
 0x15c   : > { %s1038_s7 = smov %s1040_s10  ;;  %27 = sbr.rel (!%p25_p5) target bundleno = 20 (0x14), region = 94 }
 0x163   :  { %389 = vsyncpa [#allocation5], 1 }
 0x164   :  { %391 = vsyncpa [#allocation5 + $0x1], 1 }
 0x165   :  { %392 = vsyncpa [#allocation8], 1 }
 0x166   :  { %394 = vsyncpa [#allocation8 + $0x1], 1 }
 0x167   :  { %395 = vsyncpa [#allocation6], 1 }
 0x168   :  { %397 = vsyncpa [#allocation6 + $0x1], 1 }

</bundles_post_ra>
